<compile_context>
chip_gen: v7x
topology: tpu7x:2x2x1
jax: 0.10.0
libtpu: 0.0.40
codegen_flags: <defaults>
</compile_context>

<pallas_src>
import math
import jax
import jax.numpy as jnp
from jax.experimental import pallas as pl
from jax.experimental.pallas import tpu as pltpu


def _mlp_kernel(x_ref,
                w1_ref, b1_ref,
                w2_ref, b2_ref,
                w3_ref, b3_ref,
                w4_ref, b4_ref,
                o_ref):
    # x_ref: (2, TILE_B)  -- batch on the 128-lane axis
    x = x_ref[...]
    w1 = w1_ref[...]                                        # (NN, 2)  PyTorch (out, in)

    # Layer 1 (K=2): two VPU broadcast multiply-adds instead of an MXU push.
    h = jnp.tanh(w1[:, 0:1] * x[0:1, :] + w1[:, 1:2] * x[1:2, :] + b1_ref[...])   # (NN, TILE_B)

    # Hidden layers: MXU matmuls, batch kept on the lane axis, f32 accumulation.
    h = jnp.tanh(jnp.dot(w2_ref[...], h, preferred_element_type=jnp.float32) + b2_ref[...])
    h = jnp.tanh(jnp.dot(w3_ref[...], h, preferred_element_type=jnp.float32) + b3_ref[...])

    # Output layer (N=1): VPU multiply + sublane reduce -> lane-dense (1, TILE_B) store.
    out = jnp.sum(w4_ref[...] * h, axis=0, keepdims=True) + b4_ref[...]            # (1, TILE_B)
    o_ref[...] = out.astype(o_ref.dtype)


def net_forward(x, params, *, tile_b=512):
    """x: (B, 2) float32.  params: PyTorch-layout weights W (out, in) and biases b (out,)."""
    B = x.shape[0]
    NN = params["w1"].shape[0]

    # Lane-aligned batch tile (multiple of 128), no larger than needed.
    tile_b = max(128, min(tile_b, pl.cdiv(B, 128) * 128))
    tile_b = pl.cdiv(tile_b, 128) * 128
    b_pad = pl.cdiv(B, tile_b) * tile_b
    grid = (b_pad // tile_b,)

    # Layout plumbing (outside the kernel): batch -> lane axis, biases as columns.
    x_t = jnp.pad(x.astype(jnp.float32), ((0, b_pad - B), (0, 0))).T       # (2, B_pad)
    w1 = params["w1"]                         # (NN, 2)
    b1 = params["b1"].reshape(NN, 1)
    w2 = params["w2"]                         # (NN, NN)
    b2 = params["b2"].reshape(NN, 1)
    w3 = params["w3"]                         # (NN, NN)
    b3 = params["b3"].reshape(NN, 1)
    w4 = params["w4"].reshape(NN, 1)          # (1, NN) -> column (NN, 1)
    b4 = params["b4"].reshape(1, 1)

    def full(a):
        return pl.BlockSpec(a.shape, lambda i: (0,) * a.ndim)

    in_specs = [
        pl.BlockSpec((2, tile_b), lambda i: (0, i)),        # x tile streams
        full(w1), full(b1),                                 # weights resident
        full(w2), full(b2),
        full(w3), full(b3),
        full(w4), full(b4),
    ]
    out_specs = pl.BlockSpec((1, tile_b), lambda i: (0, i))

    n_param = 2 * NN + NN + 2 * NN * NN + 2 * NN + NN + 1
    cost = pl.CostEstimate(
        flops=2 * b_pad * (2 * NN + NN * NN + NN * NN + NN),
        transcendentals=3 * b_pad * NN,
        bytes_accessed=4 * (3 * b_pad + n_param),
    )

    out_t = pl.pallas_call(
        _mlp_kernel,
        out_shape=jax.ShapeDtypeStruct((1, b_pad), jnp.float32),
        grid=grid,
        in_specs=in_specs,
        out_specs=out_specs,
        compiler_params=pltpu.CompilerParams(dimension_semantics=("parallel",)),
        cost_estimate=cost,
    )(x_t, w1, b1, w2, b2, w3, b3, w4, b4)

    return out_t[0, :B].reshape(B, 1)


def init_params(key, NN):
    """PyTorch nn.Linear layout/init: W (out, in), b (out,), U(-1/sqrt(fan_in), 1/sqrt(fan_in))."""
    def linear(key, fan_in, fan_out):
        kw, kb = jax.random.split(key)
        bound = 1.0 / math.sqrt(fan_in)
        w = jax.random.uniform(kw, (fan_out, fan_in), jnp.float32, -bound, bound)
        b = jax.random.uniform(kb, (fan_out,), jnp.float32, -bound, bound)
        return w, b

    k1, k2, k3, k4 = jax.random.split(key, 4)
    w1, b1 = linear(k1, 2, NN)
    w2, b2 = linear(k2, NN, NN)
    w3, b3 = linear(k3, NN, NN)
    w4, b4 = linear(k4, NN, 1)
    return {"w1": w1, "b1": b1, "w2": w2, "b2": b2,
            "w3": w3, "b3": b3, "w4": w4, "b4": b4}


if __name__ == "__main__":
    NN = 32        # hidden width
    B = 8          # small batch of (x, t) collocation pairs; kernel pads to a 128-lane tile

    key = jax.random.PRNGKey(0)
    kp, kx = jax.random.split(key)
    params = init_params(kp, NN)
    x = jax.random.normal(kx, (B, 2), dtype=jnp.float32)

    out = net_forward(x, params)
    out = jax.block_until_ready(out)

    # Pure-JAX reference of the PyTorch semantics: y = x @ W.T + b.
    hp = jax.lax.Precision.HIGHEST
    ref = jnp.tanh(jnp.dot(x, params["w1"].T, precision=hp) + params["b1"])
    ref = jnp.tanh(jnp.dot(ref, params["w2"].T, precision=hp) + params["b2"])
    ref = jnp.tanh(jnp.dot(ref, params["w3"].T, precision=hp) + params["b3"])
    ref = jnp.dot(ref, params["w4"].T, precision=hp) + params["b4"]

    assert out.shape == (B, 1)
    assert jnp.allclose(out, ref, atol=1e-5), "kernel mismatch vs JAX reference"

    print("KERNEL_OK")
</pallas_src>

<mosaic_0001>
module attributes {stable_mosaic.version = 11 : i64} {
  func.func @_mlp_kernel(%arg0: i32, %arg1: memref<2x128xf32, #tpu.memory_space<vmem>>, %arg2: memref<32x2xf32, #tpu.memory_space<vmem>>, %arg3: memref<32x1xf32, #tpu.memory_space<vmem>>, %arg4: memref<32x32xf32, #tpu.memory_space<vmem>>, %arg5: memref<32x1xf32, #tpu.memory_space<vmem>>, %arg6: memref<32x32xf32, #tpu.memory_space<vmem>>, %arg7: memref<32x1xf32, #tpu.memory_space<vmem>>, %arg8: memref<32x1xf32, #tpu.memory_space<vmem>>, %arg9: memref<1x1xf32, #tpu.memory_space<vmem>>, %arg10: memref<1x128xf32, #tpu.memory_space<vmem>>) attributes {dimension_semantics = [#tpu.dimension_semantics<parallel>], iteration_bounds = array<i64: 1>, scalar_prefetch = 0 : i64, scratch_operands = 0 : i64, tpu.core_type = #tpu.core_type<tc>, window_params = [{transform_indices = @transform_0, window_bounds = array<i64: 2, 128>}, {pipeline_mode = #tpu.pipeline_mode<synchronous>, transform_indices = @transform_1, window_bounds = array<i64: 32, 2>}, {pipeline_mode = #tpu.pipeline_mode<synchronous>, transform_indices = @transform_2, window_bounds = array<i64: 32, 1>}, {pipeline_mode = #tpu.pipeline_mode<synchronous>, transform_indices = @transform_3, window_bounds = array<i64: 32, 32>}, {pipeline_mode = #tpu.pipeline_mode<synchronous>, transform_indices = @transform_4, window_bounds = array<i64: 32, 1>}, {pipeline_mode = #tpu.pipeline_mode<synchronous>, transform_indices = @transform_5, window_bounds = array<i64: 32, 32>}, {pipeline_mode = #tpu.pipeline_mode<synchronous>, transform_indices = @transform_6, window_bounds = array<i64: 32, 1>}, {pipeline_mode = #tpu.pipeline_mode<synchronous>, transform_indices = @transform_7, window_bounds = array<i64: 32, 1>}, {pipeline_mode = #tpu.pipeline_mode<synchronous>, transform_indices = @transform_8, window_bounds = array<i64: 1, 1>}, {transform_indices = @transform_9, window_bounds = array<i64: 1, 128>}]} {
    %c0 = arith.constant 0 : index
    %c0_0 = arith.constant 0 : index
    %0 = vector.load %arg1[%c0, %c0_0] : memref<2x128xf32, #tpu.memory_space<vmem>>, vector<2x128xf32>
    %c0_1 = arith.constant 0 : index
    %c0_2 = arith.constant 0 : index
    %1 = vector.load %arg2[%c0_1, %c0_2] : memref<32x2xf32, #tpu.memory_space<vmem>>, vector<32x2xf32>
    %2 = vector.extract_strided_slice %1 {offsets = [0, 0], sizes = [32, 1], strides = [1, 1]} : vector<32x2xf32> to vector<32x1xf32>
    %3 = vector.extract_strided_slice %0 {offsets = [0, 0], sizes = [1, 128], strides = [1, 1]} : vector<2x128xf32> to vector<1x128xf32>
    %4 = vector.broadcast %2 : vector<32x1xf32> to vector<32x128xf32>
    %5 = vector.broadcast %3 : vector<1x128xf32> to vector<32x128xf32>
    %6 = arith.mulf %4, %5 : vector<32x128xf32>
    %7 = vector.extract_strided_slice %1 {offsets = [0, 1], sizes = [32, 1], strides = [1, 1]} : vector<32x2xf32> to vector<32x1xf32>
    %8 = vector.extract_strided_slice %0 {offsets = [1, 0], sizes = [1, 128], strides = [1, 1]} : vector<2x128xf32> to vector<1x128xf32>
    %9 = vector.broadcast %7 : vector<32x1xf32> to vector<32x128xf32>
    %10 = vector.broadcast %8 : vector<1x128xf32> to vector<32x128xf32>
    %11 = arith.mulf %9, %10 : vector<32x128xf32>
    %12 = arith.addf %6, %11 : vector<32x128xf32>
    %c0_3 = arith.constant 0 : index
    %c0_4 = arith.constant 0 : index
    %13 = vector.load %arg3[%c0_3, %c0_4] : memref<32x1xf32, #tpu.memory_space<vmem>>, vector<32x1xf32>
    %14 = vector.broadcast %13 : vector<32x1xf32> to vector<32x128xf32>
    %15 = arith.addf %12, %14 : vector<32x128xf32>
    %16 = math.tanh %15 : vector<32x128xf32>
    %c0_5 = arith.constant 0 : index
    %c0_6 = arith.constant 0 : index
    %17 = vector.load %arg4[%c0_5, %c0_6] : memref<32x32xf32, #tpu.memory_space<vmem>>, vector<32x32xf32>
    %cst = arith.constant dense<0.000000e+00> : vector<32x128xf32>
    %18 = tpu.matmul %17, %16, %cst {dimension_numbers = #tpu.dot_dimension_numbers<[1], [0], [0], [1], [0, 0, 1, 1], [], []>} : vector<32x32xf32>, vector<32x128xf32>, vector<32x128xf32> -> vector<32x128xf32>
    %c0_7 = arith.constant 0 : index
    %c0_8 = arith.constant 0 : index
    %19 = vector.load %arg5[%c0_7, %c0_8] : memref<32x1xf32, #tpu.memory_space<vmem>>, vector<32x1xf32>
    %20 = vector.broadcast %19 : vector<32x1xf32> to vector<32x128xf32>
    %21 = arith.addf %18, %20 : vector<32x128xf32>
    %22 = math.tanh %21 : vector<32x128xf32>
    %c0_9 = arith.constant 0 : index
    %c0_10 = arith.constant 0 : index
    %23 = vector.load %arg6[%c0_9, %c0_10] : memref<32x32xf32, #tpu.memory_space<vmem>>, vector<32x32xf32>
    %cst_11 = arith.constant dense<0.000000e+00> : vector<32x128xf32>
    %24 = tpu.matmul %23, %22, %cst_11 {dimension_numbers = #tpu.dot_dimension_numbers<[1], [0], [0], [1], [0, 0, 1, 1], [], []>} : vector<32x32xf32>, vector<32x128xf32>, vector<32x128xf32> -> vector<32x128xf32>
    %c0_12 = arith.constant 0 : index
    %c0_13 = arith.constant 0 : index
    %25 = vector.load %arg7[%c0_12, %c0_13] : memref<32x1xf32, #tpu.memory_space<vmem>>, vector<32x1xf32>
    %26 = vector.broadcast %25 : vector<32x1xf32> to vector<32x128xf32>
    %27 = arith.addf %24, %26 : vector<32x128xf32>
    %28 = math.tanh %27 : vector<32x128xf32>
    %c0_14 = arith.constant 0 : index
    %c0_15 = arith.constant 0 : index
    %29 = vector.load %arg8[%c0_14, %c0_15] : memref<32x1xf32, #tpu.memory_space<vmem>>, vector<32x1xf32>
    %30 = vector.broadcast %29 : vector<32x1xf32> to vector<32x128xf32>
    %31 = arith.mulf %30, %28 : vector<32x128xf32>
    %cst_16 = arith.constant dense<0.000000e+00> : vector<128xf32>
    %32 = vector.multi_reduction <add>, %31, %cst_16 [0] : vector<32x128xf32> to vector<128xf32>
    %33 = vector.shape_cast %32 : vector<128xf32> to vector<1x128xf32>
    %c0_17 = arith.constant 0 : index
    %c0_18 = arith.constant 0 : index
    %34 = vector.load %arg9[%c0_17, %c0_18] : memref<1x1xf32, #tpu.memory_space<vmem>>, vector<1x1xf32>
    %35 = vector.broadcast %34 : vector<1x1xf32> to vector<1x128xf32>
    %36 = arith.addf %33, %35 : vector<1x128xf32>
    %c0_19 = arith.constant 0 : index
    %c0_20 = arith.constant 0 : index
    %37 = vector.load %arg10[%c0_19, %c0_20] : memref<1x128xf32, #tpu.memory_space<vmem>>, vector<1x128xf32>
    tpu.vector_store %arg10[%c0_19, %c0_20], %36 {strides = array<i32>} : memref<1x128xf32, #tpu.memory_space<vmem>>, vector<1x128xf32>,
    return
  }
  func.func @transform_0(%arg0: i32) -> (i32, i32) {
    %c0_i32 = arith.constant 0 : i32
    %c0_i32_0 = arith.constant 0 : i32
    return %c0_i32, %arg0 : i32, i32
  }
  func.func @transform_1(%arg0: i32) -> (i32, i32) {
    %c0_i32 = arith.constant 0 : i32
    %c0_i32_0 = arith.constant 0 : i32
    %c0_i32_1 = arith.constant 0 : i32
    return %c0_i32, %c0_i32_0 : i32, i32
  }
  func.func @transform_2(%arg0: i32) -> (i32, i32) {
    %c0_i32 = arith.constant 0 : i32
    %c0_i32_0 = arith.constant 0 : i32
    %c0_i32_1 = arith.constant 0 : i32
    return %c0_i32, %c0_i32_0 : i32, i32
  }
  func.func @transform_3(%arg0: i32) -> (i32, i32) {
    %c0_i32 = arith.constant 0 : i32
    %c0_i32_0 = arith.constant 0 : i32
    %c0_i32_1 = arith.constant 0 : i32
    return %c0_i32, %c0_i32_0 : i32, i32
  }
  func.func @transform_4(%arg0: i32) -> (i32, i32) {
    %c0_i32 = arith.constant 0 : i32
    %c0_i32_0 = arith.constant 0 : i32
    %c0_i32_1 = arith.constant 0 : i32
    return %c0_i32, %c0_i32_0 : i32, i32
  }
  func.func @transform_5(%arg0: i32) -> (i32, i32) {
    %c0_i32 = arith.constant 0 : i32
    %c0_i32_0 = arith.constant 0 : i32
    %c0_i32_1 = arith.constant 0 : i32
    return %c0_i32, %c0_i32_0 : i32, i32
  }
  func.func @transform_6(%arg0: i32) -> (i32, i32) {
    %c0_i32 = arith.constant 0 : i32
    %c0_i32_0 = arith.constant 0 : i32
    %c0_i32_1 = arith.constant 0 : i32
    return %c0_i32, %c0_i32_0 : i32, i32
  }
  func.func @transform_7(%arg0: i32) -> (i32, i32) {
    %c0_i32 = arith.constant 0 : i32
    %c0_i32_0 = arith.constant 0 : i32
    %c0_i32_1 = arith.constant 0 : i32
    return %c0_i32, %c0_i32_0 : i32, i32
  }
  func.func @transform_8(%arg0: i32) -> (i32, i32) {
    %c0_i32 = arith.constant 0 : i32
    %c0_i32_0 = arith.constant 0 : i32
    %c0_i32_1 = arith.constant 0 : i32
    return %c0_i32, %c0_i32_0 : i32, i32
  }
  func.func @transform_9(%arg0: i32) -> (i32, i32) {
    %c0_i32 = arith.constant 0 : i32
    %c0_i32_0 = arith.constant 0 : i32
    return %c0_i32, %arg0 : i32, i32
  }
}

</mosaic_0001>

<bundles_post_ra>
// kernel: tpu_custom_call.1
= control target key start
LH: loop header
LB: loop body
LE: loop exit
PB: predicated region body
PF: predicated region fallthrough
CT: control target
= control target key end

     0   :  { %s746_s0 = inlined_call_operand.vmem [shape: f32[2,128], index: 0, kind: input, shape index: {}]   ;;  %s747_s1 = inlined_call_operand.vmem [shape: f32[32,2], index: 1, kind: input, shape index: {}]   ;;  %s748_s2 = inlined_call_operand.vmem [shape: f32[32,1], index: 2, kind: input, shape index: {}]   ;;  %s749_s3 = inlined_call_operand.vmem [shape: f32[32,32], index: 3, kind: input, shape index: {}]   ;;  %s750_s4 = inlined_call_operand.vmem [shape: f32[32,1], index: 4, kind: input, shape index: {}]   ;;  %s751_s5 = inlined_call_operand.vmem [shape: f32[32,32], index: 5, kind: input, shape index: {}]   ;;  %s752_s6 = inlined_call_operand.vmem [shape: f32[32,1], index: 6, kind: input, shape index: {}]   ;;  %s753_s7 = inlined_call_operand.vmem [shape: f32[32,1], index: 7, kind: input, shape index: {}]   ;;  %s754_s8 = inlined_call_operand.<no memory space> [shape: f32[1,1], index: 8, kind: input, shape index: {}]   ;;  %s755_s9 = inlined_call_operand.hbm [shape: f32[1,128], index: 9, kind: output, shape index: {}]  }
   0x1   :  { %v14_v0 = vstv %s754_s8 }
   0x2   :  { %15 = vst [vmem:[#allocation2] sm:$0x1] %v14_v0 }
   0x3   :  { %v38_v1 = vld [vmem:[%s747_s1 + $0x10] sm:$0xff]  ;;  %v36_v2 = vld [vmem:[%s747_s1] sm:$0xff]  ;;  %v575_v3 = vmov 1   ;;  %v37_v4 = vld [vmem:[%s747_s1 + $0x8] sm:$0xff]  ;;  %v576_v5 = vmov 0  }
   0x4   :  { %523 = vset.pattern.permute.xlu0 %v575_v3  ;;  %521 = vset.pattern.permute.xlu1 %v575_v3 }
   0x5   :  { %77 = vperm.xlu0 %523, %v38_v1   ;;  %69 = vperm.xlu1 %521, %v36_v2  }
   0x9   :  { %524 = vset.pattern.permute.xlu0 %v576_v5  ;;  %73 = vperm.xlu1 %521, %v37_v4  }
   0xa   :  { %42 = vperm.xlu0 %524, %v36_v2  }
   0xb   :  { %16 = vsyncpa [#allocation4], 0  ;;  %v39_v6 = vld [vmem:[%s747_s1 + $0x18] sm:$0xff]  ;;  %v97_v7 = vld [vmem:[%s748_s2 + $0x8] sm:$0xff]  ;;  %vm156_vm0 = vcmask 261120   ;;  %v60_v25 = vlaneseq }
   0xc   :  { %v96_v8 = vld [vmem:[%s748_s2] sm:$0xff]  ;;  %v98_v10 = vld [vmem:[%s748_s2 + $0x10] sm:$0xff]  ;;  %v99_v12 = vld [vmem:[%s748_s2 + $0x18] sm:$0xff] }
   0xd   :  { %522 = vset.pattern.permute.xlu1 %v576_v5  ;;  %v132_v9 = vld [vmem:[%s750_s4] sm:$0xff]  ;;  %v134_v11 = vld [vmem:[%s750_s4 + $0x10] sm:$0xff]  ;;  %v133_v14 = vld [vmem:[%s750_s4 + $0x8] sm:$0xff]  ;;  %v695_v28 = vshrl.u32 %v60_v25, 7 }
   0xe   :  { %47 = vperm.xlu0 %524, %v37_v4   ;;  %57 = vperm.xlu1 %522, %v39_v6   ;;  %v262_v13 = vld [vmem:[%s752_s6] sm:$0xff]  ;;  %v264_v15 = vld [vmem:[%s752_s6 + $0x10] sm:$0xff]  ;;  %v135_v16 = vld [vmem:[%s750_s4 + $0x18] sm:$0xff] }
   0xf   :  { %v387_v17 = vld [vmem:[%s753_s7] sm:$0xff]  ;;  %v263_v18 = vld [vmem:[%s752_s6 + $0x8] sm:$0xff]  ;;  %v389_v19 = vld [vmem:[%s753_s7 + $0x10] sm:$0xff]  ;;  %v62_v31 = vsub.s32 0, %v695_v28  ;;  %v86_v32 = vsub.s32 1, %v695_v28 }
  0x10   :  { %v265_v20 = vld [vmem:[%s752_s6 + $0x18] sm:$0xff]  ;;  %v424_v21 = vld [vmem:[#allocation2] sm:$0x1]  ;;  %v388_v22 = vld [vmem:[%s753_s7 + $0x8] sm:$0xff] }
  0x11   :  { %v128_v23 = vld [vmem:[%s749_s3] sm:$0xff]  ;;  %v390_v24 = vld [vmem:[%s753_s7 + $0x18] sm:$0xff]  ;;  %v129_v2 = vld [vmem:[%s749_s3 + $0x8] sm:$0xff] }
  0x12   :  { %52 = vperm.xlu0 %524, %v38_v1   ;;  %525 = vset.pattern.permute.xlu1 %v575_v3  ;;  %v35_v33 = vld [vmem:[%s746_s0] sm:$0x3]  ;;  %v130_v3 = vld [vmem:[%s749_s3 + $0x10] sm:$0xff]  ;;  %v131_v4 = vld [vmem:[%s749_s3 + $0x18] sm:$0xff] }
  0x13   :  { %81 = vperm.xlu1 %525, %v39_v6   ;;  %482 = vmatprep.mubr.msk.f32.mxu0 %vm156_vm0, %v128_v23  ;;  %v63_v36 = vrot.slane %v35_v33, %v62_v31  ;;  %v87_v37 = vrot.slane %v35_v33, %v86_v32  ;;  %v260_v25 = vld [vmem:[%s751_s5 + $0x10] sm:$0xff] }
  0x16   :  { %107 = vperm.xlu0 %524, %v97_v7  }
  0x17   :  { %526 = vset.pattern.permute.xlu1 %v576_v5  ;;  %v258_v5 = vld [vmem:[%s751_s5] sm:$0xff] }
  0x18   :  { %102 = vperm.xlu1 %526, %v96_v8   ;;  %496 = vmatprep.mubr.msk.f32.mxu1 %vm156_vm0, %v258_v5 }
  0x1a   :  { %138 = vperm.xlu0 %524, %v132_v9  }
  0x1c   :  { %112 = vperm.xlu1 %526, %v98_v10  }
  0x1e   :  { %148 = vperm.xlu0 %524, %v134_v11  }
  0x20   :  { %117 = vperm.xlu1 %526, %v99_v12  }
  0x22   :  { %268 = vperm.xlu0 %524, %v262_v13  }
  0x24   :  { %143 = vperm.xlu1 %526, %v133_v14  }
  0x26   :  { %278 = vperm.xlu0 %524, %v264_v15  }
  0x28   :  { %153 = vperm.xlu1 %526, %v135_v16  }
  0x2a   :  { %393 = vperm.xlu0 %524, %v387_v17  }
  0x2c   :  { %273 = vperm.xlu1 %526, %v263_v18  }
  0x2e   :  { %403 = vperm.xlu0 %524, %v389_v19  }
  0x30   :  { %283 = vperm.xlu1 %526, %v265_v20  }
  0x32   :  { %427 = vperm.xlu0 %524, %v424_v21  }
  0x34   :  { %398 = vperm.xlu1 %526, %v388_v22  }
  0x38   :  { %408 = vperm.xlu1 %526, %v390_v24   ;;  %v259_v24 = vld [vmem:[%s751_s5 + $0x8] sm:$0xff] }
  0x84   :  { %v70_v26 = vpop.permute.xlu1 %69  ;;  %v78_v27 = vpop.permute.xlu0 %77 }
  0x85   :  { %v88_v43 = vmul.f32 %v87_v37, %v70_v26  ;;  %v90_v51 = vmul.f32 %v87_v37, %v78_v27  ;;  %v261_v26 = vld [vmem:[%s751_s5 + $0x18] sm:$0xff]  ;;  %s577_s5 = smov [#allocation3]  }
  0x86   :  { %s442_s16 = sshll.u32 %s577_s5, 4  ;;  %s443_s16 = int_to_ptr.vmem [resolvable:$true] %s442_s16 }
  0x87   :  { %s551_s8 = scalar_lea.vmem %s443_s16, 16  ;;  %s555_s17 = scalar_lea.vmem %s443_s16, 32 }
  0x88   :  { %v74_v29 = vpop.permute.xlu1 %73  ;;  %p552_p0 = scmp.ne.s32.totalorder %s443_s16, %s551_s8  ;;  %p556_p1 = scmp.lt.s32.totalorder %s443_s16, %s443_s16 }
  0x89   :  { %v43_v30 = vpop.permute.xlu0 %42  ;;  %v89_v40 = vmul.f32 %v87_v37, %v74_v29  ;;  %p557_p2 = scmp.lt.s32.totalorder %s555_s17, %s551_s8 }
  0x8a   :  { %v64_v41 = vmul.f32 %v63_v36, %v43_v30 }
  0x8b   :  { %p558_p3 = por %p557_p2, %p556_p1 }
  0x8c   :  { %v92_v47 = vadd.f32 %v88_v43, %v64_v41 }
  0x8d   :  { %v48_v34 = vpop.permute.xlu0 %47  ;;  %v58_v35 = vpop.permute.xlu1 %57  ;;  %p559_p4 = pnand %p558_p3, %p552_p0 }
  0x8e   :  { %v65_v38 = vmul.f32 %v63_v36, %v48_v34  ;;  %v67_v55 = vmul.f32 %v63_v36, %v58_v35 }
  0x90   :  { %v93_v44 = vadd.f32 %v89_v40, %v65_v38 }
  0x91   :  { %v53_v39 = vpop.permute.xlu0 %52 }
  0x92   :  { %v82_v42 = vpop.permute.xlu1 %81  ;;  %v66_v48 = vmul.f32 %v63_v36, %v53_v39 }
  0x93   :  { %v91_v52 = vmul.f32 %v87_v37, %v82_v42 }
  0x94   :  { %v94_v54 = vadd.f32 %v90_v51, %v66_v48 }
  0x95   :  { %v108_v45 = vpop.permute.xlu0 %107  ;;  %v95_v57 = vadd.f32 %v91_v52, %v67_v55 }
  0x96   :  { %v121_v46 = vadd.f32 %v108_v45, %v93_v44 }
  0x97   :  { %v103_v49 = vpop.permute.xlu1 %102 }
  0x98   :  { %v120_v50 = vadd.f32 %v103_v49, %v92_v47  ;;  %527 = vtanh.f32 %v121_v46 }
  0x99   :  { %v139_v7 = vpop.permute.xlu0 %138 }
  0x9a   :  { %529 = vtanh.f32 %v120_v50 }
  0x9b   :  { %v113_v53 = vpop.permute.xlu1 %112 }
  0x9c   :  { %v122_v56 = vadd.f32 %v113_v53, %v94_v54 }
  0x9d   :  { %v149_v14 = vpop.permute.xlu0 %148 }
  0x9e   :  { %531 = vtanh.f32 %v122_v56 }
  0x9f   :  { %v118_v58 = vpop.permute.xlu1 %117 }
  0xa0   :  { %v123_v59 = vadd.f32 %v118_v58, %v95_v57 }
  0xa1   :  { %v269_v29 = vpop.permute.xlu0 %268 }
  0xa2   :  { %533 = vtanh.f32 %v123_v59  ;;  %v528_v60 = vpop.eup %527 }
  0xa3   :  { %v144_v6 = vpop.permute.xlu1 %143 }
  0xa4   :  { %v530_v61 = vpop.eup %529 }
  0xa5   :  { %v502_v62 = vpack.c.bf16 %v528_v60, %v530_v61  ;;  %v279_v37 = vpop.permute.xlu0 %278 }
  0xa7   :  { %503 = vmatprep.subr.bf16.mxu0 %v502_v62  ;;  %v154_v12 = vpop.permute.xlu1 %153 }
  0xa8   :  { %505 = vmatpush3.bf16.msra.mxu0 %v502_v62  ;;  %v532_v63 = vpop.eup %531 }
  0xa9   :  { %v394_v41 = vpop.permute.xlu0 %393 }
  0xab   :  { %v274_v27 = vpop.permute.xlu1 %273 }
  0xac   :  { %v534_v0 = vpop.eup %533 }
  0xad   :  { %v506_v1 = vpack.c.bf16 %v534_v0, %v532_v63  ;;  %v404_v50 = vpop.permute.xlu0 %403 }
  0xaf   :  { %507 = vmatprep.subr.bf16.mxu0 %v506_v1  ;;  %v284_v35 = vpop.permute.xlu1 %283 }
  0xb0   :  { %509 = vmatpush3.bf16.msra.mxu0 %v506_v1 }
  0xb1   :  { %v428_v60 = vpop.permute.xlu0 %427 }
  0xb2   :  { %v433_v62 = vrot.slane %v428_v60, %v62_v31 }
  0xb3   :  { %483 = vmatmul.mubr.msk.f32.vlgmr.msra.gmra.mrb[0].mxu0 %vm156_vm0, %v129_v2  ;;  %v399_v43 = vpop.permute.xlu1 %398 }
  0xb4   :  { %485 = vmatprep.mubr.msk.f32.mxu0 %vm156_vm0, %v130_v3 }
  0xb7   :  { %486 = vmatmul.mubr.msk.f32.gmra.mrb[2].mxu0 %vm156_vm0, %v131_v4  ;;  %v409_v52 = vpop.permute.xlu1 %408 }
 0x186   :  { %v484_v8 = vpop.f32.mrb[0].mxu0 }
 0x187   :  { %v241_v9 = vadd.f32 %v484_v8, %v144_v6  ;;  %v235_v10 = vpop.f32.mrb[1].mxu0 }
 0x188   :  { %v236_v11 = vadd.f32 %v235_v10, %v139_v7 }
 0x189   :  { %535 = vtanh.f32 %v241_v9 }
 0x18a   :  { %537 = vtanh.f32 %v236_v11  ;;  %v487_v13 = vpop.f32.mrb[2].mxu0 }
 0x18b   :  { %v251_v15 = vadd.f32 %v487_v13, %v154_v12  ;;  %v245_v16 = vpop.f32.mrb[3].mxu0 }
 0x18c   :  { %v246_v17 = vadd.f32 %v245_v16, %v149_v14 }
 0x18d   :  { %539 = vtanh.f32 %v251_v15 }
 0x18e   :  { %541 = vtanh.f32 %v246_v17 }
 0x193   :  { %v536_v18 = vpop.eup %535 }
 0x194   :  { %v538_v19 = vpop.eup %537 }
 0x195   :  { %v510_v20 = vpack.c.bf16 %v536_v18, %v538_v19 }
 0x197   :  { %v540_v21 = vpop.eup %539  ;;  %511 = vmatprep.subr.bf16.mxu1 %v510_v20 }
 0x198   :  { %v542_v22 = vpop.eup %541  ;;  %513 = vmatpush3.bf16.msra.mxu1 %v510_v20 }
 0x199   :  { %v514_v23 = vpack.c.bf16 %v540_v21, %v542_v22 }
 0x19b   :  { %515 = vmatprep.subr.bf16.mxu1 %v514_v23 }
 0x19c   :  { %517 = vmatpush3.bf16.msra.mxu1 %v514_v23 }
 0x19f   :  { %497 = vmatmul.mubr.msk.f32.vlgmr.msra.gmra.mrb[0].mxu1 %vm156_vm0, %v259_v24 }
 0x1a0   :  { %499 = vmatprep.mubr.msk.f32.mxu1 %vm156_vm0, %v260_v25 }
 0x1a3   :  { %500 = vmatmul.mubr.msk.f32.gmra.mrb[2].mxu1 %vm156_vm0, %v261_v26 }
 0x272   :  { %v498_v30 = vpop.f32.mrb[0].mxu1 }
 0x273   :  { %v370_v32 = vadd.f32 %v498_v30, %v274_v27  ;;  %v364_v33 = vpop.f32.mrb[1].mxu1 }
 0x274   :  { %v365_v34 = vadd.f32 %v364_v33, %v269_v29 }
 0x275   :  { %543 = vtanh.f32 %v370_v32 }
 0x276   :  { %545 = vtanh.f32 %v365_v34  ;;  %v501_v36 = vpop.f32.mrb[2].mxu1 }
 0x277   :  { %v380_v38 = vadd.f32 %v501_v36, %v284_v35  ;;  %v374_v39 = vpop.f32.mrb[3].mxu1 }
 0x278   :  { %v375_v40 = vadd.f32 %v374_v39, %v279_v37 }
 0x279   :  { %547 = vtanh.f32 %v380_v38 }
 0x27a   :  { %549 = vtanh.f32 %v375_v40 }
 0x27f   :  { %v544_v42 = vpop.eup %543 }
 0x280   :  { %v546_v44 = vpop.eup %545  ;;  %v412_v45 = vmul.f32 %v544_v42, %v399_v43 }
 0x281   :  { %v411_v46 = vmul.f32 %v546_v44, %v394_v41 }
 0x283   :  { %v548_v47 = vpop.eup %547  ;;  %v415_v48 = vadd.f32 %v412_v45, %v411_v46 }
 0x284   :  { %v550_v49 = vpop.eup %549  ;;  %v414_v53 = vmul.f32 %v548_v47, %v409_v52 }
 0x285   :  { %v413_v51 = vmul.f32 %v550_v49, %v404_v50 }
 0x287   :  { %v416_v54 = vadd.f32 %v415_v48, %v413_v51 }
 0x289   :  { %v417_v55 = vadd.f32 %v416_v54, %v414_v53 }
 0x28b   :  { %v418_v56 = vrot.slane %v417_v55, 4 }
 0x28d   :  { %v419_v57 = vadd.f32 %v418_v56, %v417_v55 }
 0x28f   :  { %v420_v58 = vrot.slane %v419_v57, 2 }
 0x291   :  { %v421_v59 = vadd.f32 %v420_v58, %v419_v57 }
 0x293   :  { %v422_v61 = vrot.slane %v421_v59, 1 }
 0x295   :  { %v423_v63 = vadd.f32 %v422_v61, %v421_v59 }
 0x297   :  { %v434_v0 = vadd.f32 %v433_v62, %v423_v63 }
 0x299   :  { %435 = vst [vmem:[#allocation3] sm:$0x1] %v434_v0 }
 0x29a   :  { %562 = shalt.err (!%p559_p4)
}
 0x29b   :  { %s563_s20 = scalar_lea.hbm %s755_s9, 16 }
 0x29c   :  { %p564_p5 = scmp.ne.s32.totalorder %s755_s9, %s563_s20  ;;  %p567_p6 = scmp.lt.u32.totalorder %s563_s20, %s755_s9 }
 0x29e   :  { %p569_p7 = pnand %p567_p6, %p564_p5 }
 0x2a0   :  { %572 = shalt.err (!%p569_p7)
}
 0x2a1   :  { %445 = dma.vmem_to_hbm [thread:$0]  %s443_s16, 16, %s755_s9, [#allocation4]  }
 0x2a2   :  { %573 = dma.done.wait [#allocation4], 16  }
 0x2a3   :  { %574 = vsyncadd [#allocation4], 4294967280 }
 0x2a4   :  { %449 = vsyncpa [#allocation4], 1 }

</bundles_post_ra>
